<compile_context>
chip_gen: v7x
topology: tpu7x:2x2x1
jax: 0.10.0
libtpu: 0.0.40
codegen_flags: <defaults>
</compile_context>

<pallas_src>
import functools
import math

import jax
import jax.numpy as jnp
from jax.experimental import pallas as pl
from jax.experimental.pallas import tpu as pltpu

BN_EPS = 1e-5
LANE = 128


def _round_up(n, m=LANE):
    return ((n + m - 1) // m) * m


def _full_spec(shape):
    # Whole-array block; grid=() -> index_map takes no args.
    return pl.BlockSpec(shape, lambda: tuple(0 for _ in shape))


def _pad2d(a, rows, cols):
    a = jnp.asarray(a, jnp.float32)
    return jnp.pad(a, ((0, rows - a.shape[0]), (0, cols - a.shape[1])))


# ------------------------------- kernel -----------------------------------

def _make_fused_kernel(num_hidden):
    """Chains num_hidden (Linear -> BN -> ReLU) blocks plus the output
    Linear, entirely in VMEM/vregs (no HBM round trips for activations)."""

    def kernel(*refs):
        x_ref = refs[0]
        o_ref = refs[-1]
        prm = refs[1:-1]

        h = x_ref[...]
        # Static batch size; no row padding is ever introduced, so the BN
        # statistics divisor is exact.
        inv_b = 1.0 / h.shape[0]

        idx = 0
        for _ in range(num_hidden):
            w_ref, p_ref = prm[idx], prm[idx + 1]
            idx += 2
            # Linear (MXU, f32 accumulate)
            z = jnp.dot(h, w_ref[...], preferred_element_type=jnp.float32)
            p = p_ref[...]            # (3, D): rows = [bias, gamma, beta]
            z = z + p[0:1, :]
            # BatchNorm1d (training): one-pass batch stats, biased variance.
            mean = jnp.sum(z, axis=0, keepdims=True) * inv_b
            var = jnp.sum(z * z, axis=0, keepdims=True) * inv_b - mean * mean
            var = jnp.maximum(var, 0.0)          # guard cancellation -> no NaN
            scale = p[1:2, :] * jax.lax.rsqrt(var + BN_EPS)   # gamma folded in
            shift = p[2:3, :] - mean * scale                  # mean folded in
            # ReLU
            h = jnp.maximum(z * scale + shift, 0.0)

        # Output head: Linear only (lane-dense padded store).
        w_out_ref, b_out_ref = prm[idx], prm[idx + 1]
        o_ref[...] = (
            jnp.dot(h, w_out_ref[...], preferred_element_type=jnp.float32)
            + b_out_ref[...]
        )

    return kernel


# ------------------------- one-time parameter prep -------------------------

def prepare_params(hidden_params, out_params, input_size, output_size):
    """Pads/packs all parameters once (outside the per-call jit).

    Returns (flat_params, d_in_pad, d_out_pad) where flat_params is
    [W0_pad, pack0, W1_pad, pack1, ..., Wout_pad, bout_pad] and each pack is
    a (3, D_pad) array whose rows are [bias, gamma, beta]. Padded columns
    have weight=0, bias=0, gamma=0, beta=0, so they are mathematically inert.
    """
    d_in_pad = _round_up(input_size)
    prev = d_in_pad
    flat = []
    for (w, b, gamma, beta) in hidden_params:
        dout_pad = _round_up(w.shape[1])
        w_p = _pad2d(w, prev, dout_pad)
        packed = jnp.concatenate(
            [_pad2d(b, 1, dout_pad),
             _pad2d(gamma, 1, dout_pad),
             _pad2d(beta, 1, dout_pad)],
            axis=0,
        )
        flat += [w_p, packed]
        prev = dout_pad
    w_out, b_out = out_params
    d_out_pad = _round_up(output_size)
    flat += [_pad2d(w_out, prev, d_out_pad), _pad2d(b_out, 1, d_out_pad)]
    flat = tuple(jax.device_put(a) for a in flat)
    return flat, d_in_pad, d_out_pad


# ------------------------------- forward ----------------------------------

@functools.partial(jax.jit, static_argnames=("output_size",))
def fully_connected_new_forward(x, flat_params, *, output_size):
    """Fused forward pass. x: (B, d_in) f32; flat_params from prepare_params.
    B must be a multiple of 8 (sublane alignment; BN stats span the block)."""
    B, d_in = x.shape
    assert B % 8 == 0, "batch must be a multiple of 8"
    num_hidden = (len(flat_params) - 2) // 2
    d_in_pad = flat_params[0].shape[0]
    d_out_pad = flat_params[-1].shape[1]

    x_p = jnp.pad(x, ((0, 0), (0, d_in_pad - d_in)))

    # VMEM budget from the actual padded shapes (x, params, output, a few
    # live activation slabs) with 2x headroom; clamp to v7x's 64 MiB physical.
    param_bytes = sum(math.prod(p.shape) * 4 for p in flat_params)
    widest = max([d_in_pad, d_out_pad] + [p.shape[1] for p in flat_params])
    vmem_bytes = int(
        min(max(2 * (param_bytes + 5 * B * widest * 4), 8 << 20), 64 << 20)
    )

    in_specs = [_full_spec(x_p.shape)] + [_full_spec(p.shape) for p in flat_params]

    out_p = pl.pallas_call(
        _make_fused_kernel(num_hidden),
        out_shape=jax.ShapeDtypeStruct((B, d_out_pad), jnp.float32),
        in_specs=in_specs,
        out_specs=_full_spec((B, d_out_pad)),
        compiler_params=pltpu.CompilerParams(vmem_limit_bytes=vmem_bytes),
    )(x_p, *flat_params)

    return out_p[:, :output_size]


# ----------------------------- parameter init -----------------------------

def init_params(key, widths, output_size):
    """Synthetic init matching the module's parameter shapes.

    Per hidden layer i: Linear(widths[i], widths[i+1]) weight/bias,
    BatchNorm1d(widths[i+1]) weight ~ U(0,1), bias = 0.
    Output head: Linear(widths[-1], output_size).
    """
    hidden = []
    for i in range(len(widths) - 1):
        key, k1, k2, k3 = jax.random.split(key, 4)
        din, dout = widths[i], widths[i + 1]
        w = jax.random.normal(k1, (din, dout), jnp.float32) / jnp.sqrt(
            jnp.float32(din)
        )
        b = 0.01 * jax.random.normal(k2, (1, dout), jnp.float32)
        gamma = jax.random.uniform(k3, (1, dout), jnp.float32)  # BN weight ~ U(0,1)
        beta = jnp.zeros((1, dout), jnp.float32)                # BN bias = 0
        hidden.append((w, b, gamma, beta))
    key, k1, k2 = jax.random.split(key, 3)
    w_out = jax.random.normal(k1, (widths[-1], output_size), jnp.float32) / jnp.sqrt(
        jnp.float32(widths[-1])
    )
    b_out = 0.01 * jax.random.normal(k2, (1, output_size), jnp.float32)
    return hidden, (w_out, b_out)


def reference_forward(x, hidden_params, out_params):
    """Pure-JAX reference (two-pass BN, matches PyTorch training-mode BN)."""
    h = x
    for (w, b, gamma, beta) in hidden_params:
        z = h @ w + b
        mean = jnp.mean(z, axis=0, keepdims=True)
        var = jnp.mean((z - mean) ** 2, axis=0, keepdims=True)
        h = jnp.maximum((z - mean) / jnp.sqrt(var + BN_EPS) * gamma + beta, 0.0)
    w_out, b_out = out_params
    return h @ w_out + b_out


if __name__ == "__main__":
    # Module config: widths=32 (int), depth=3, input_size=16, output_size=1
    # -> widths array = [16, 32, 32]: two (Linear -> BN -> ReLU) blocks
    #    followed by Linear(32, 1).
    input_size = 16
    hidden_width = 32
    depth = 3
    output_size = 1
    widths = [input_size] + [hidden_width] * (depth - 1)

    # 128 rows: fills a full MXU M tile per push while keeping the whole
    # batch (and exact BN statistics) VMEM-resident in one pallas_call.
    B = 128
    key = jax.random.PRNGKey(0)
    key, kx = jax.random.split(key)
    x = jax.random.normal(kx, (B, input_size), jnp.float32)

    hidden_params, out_params = init_params(key, widths, output_size)

    # One-time parameter padding/packing (outside the per-call jit).
    flat_params, _, _ = prepare_params(
        hidden_params, out_params, input_size, output_size
    )

    y = fully_connected_new_forward(x, flat_params, output_size=output_size)
    y = jax.block_until_ready(y)
    assert y.shape == (B, output_size), y.shape

    y_ref = reference_forward(x, hidden_params, out_params)
    assert jnp.allclose(y, y_ref, rtol=1e-4, atol=1e-4), (
        float(jnp.max(jnp.abs(y - y_ref)))
    )

    print("KERNEL_OK")
</pallas_src>

<mosaic_0001>
module attributes {stable_mosaic.version = 11 : i64} {
  func.func @kernel(%arg0: memref<128x128xf32, #tpu.memory_space<vmem>>, %arg1: memref<128x128xf32, #tpu.memory_space<vmem>>, %arg2: memref<3x128xf32, #tpu.memory_space<vmem>>, %arg3: memref<128x128xf32, #tpu.memory_space<vmem>>, %arg4: memref<3x128xf32, #tpu.memory_space<vmem>>, %arg5: memref<128x128xf32, #tpu.memory_space<vmem>>, %arg6: memref<1x128xf32, #tpu.memory_space<vmem>>, %arg7: memref<128x128xf32, #tpu.memory_space<vmem>>) attributes {dimension_semantics = [], scalar_prefetch = 0 : i64, scratch_operands = 0 : i64, tpu.core_type = #tpu.core_type<tc>} {
    %c0 = arith.constant 0 : index
    %c0_0 = arith.constant 0 : index
    %0 = vector.load %arg0[%c0, %c0_0] : memref<128x128xf32, #tpu.memory_space<vmem>>, vector<128x128xf32>
    %c0_1 = arith.constant 0 : index
    %c0_2 = arith.constant 0 : index
    %1 = vector.load %arg1[%c0_1, %c0_2] : memref<128x128xf32, #tpu.memory_space<vmem>>, vector<128x128xf32>
    %cst = arith.constant dense<0.000000e+00> : vector<128x128xf32>
    %2 = tpu.matmul %0, %1, %cst {dimension_numbers = #tpu.dot_dimension_numbers<[1], [0], [0], [1], [0, 0, 1, 1], [], []>} : vector<128x128xf32>, vector<128x128xf32>, vector<128x128xf32> -> vector<128x128xf32>
    %c0_3 = arith.constant 0 : index
    %c0_4 = arith.constant 0 : index
    %3 = vector.load %arg2[%c0_3, %c0_4] : memref<3x128xf32, #tpu.memory_space<vmem>>, vector<3x128xf32>
    %4 = vector.extract_strided_slice %3 {offsets = [0, 0], sizes = [1, 128], strides = [1, 1]} : vector<3x128xf32> to vector<1x128xf32>
    %5 = vector.broadcast %4 : vector<1x128xf32> to vector<128x128xf32>
    %6 = arith.addf %2, %5 : vector<128x128xf32>
    %cst_5 = arith.constant dense<0.000000e+00> : vector<128xf32>
    %7 = vector.multi_reduction <add>, %6, %cst_5 [0] : vector<128x128xf32> to vector<128xf32>
    %8 = vector.shape_cast %7 : vector<128xf32> to vector<1x128xf32>
    %cst_6 = arith.constant 7.812500e-03 : f32
    %9 = vector.broadcast %cst_6 : f32 to vector<1x128xf32>
    %10 = arith.mulf %8, %9 : vector<1x128xf32>
    %11 = arith.mulf %6, %6 : vector<128x128xf32>
    %cst_7 = arith.constant dense<0.000000e+00> : vector<128xf32>
    %12 = vector.multi_reduction <add>, %11, %cst_7 [0] : vector<128x128xf32> to vector<128xf32>
    %13 = vector.shape_cast %12 : vector<128xf32> to vector<1x128xf32>
    %cst_8 = arith.constant 7.812500e-03 : f32
    %14 = vector.broadcast %cst_8 : f32 to vector<1x128xf32>
    %15 = arith.mulf %13, %14 : vector<1x128xf32>
    %16 = arith.mulf %10, %10 : vector<1x128xf32>
    %17 = arith.subf %15, %16 : vector<1x128xf32>
    %cst_9 = arith.constant 0.000000e+00 : f32
    %18 = vector.broadcast %cst_9 : f32 to vector<1x128xf32>
    %19 = arith.maximumf %17, %18 : vector<1x128xf32>
    %20 = vector.extract_strided_slice %3 {offsets = [1, 0], sizes = [1, 128], strides = [1, 1]} : vector<3x128xf32> to vector<1x128xf32>
    %cst_10 = arith.constant 9.99999974E-6 : f32
    %21 = vector.broadcast %cst_10 : f32 to vector<1x128xf32>
    %22 = arith.addf %19, %21 : vector<1x128xf32>
    %23 = math.rsqrt %22 : vector<1x128xf32>
    %24 = arith.mulf %20, %23 : vector<1x128xf32>
    %25 = vector.extract_strided_slice %3 {offsets = [2, 0], sizes = [1, 128], strides = [1, 1]} : vector<3x128xf32> to vector<1x128xf32>
    %26 = arith.mulf %10, %24 : vector<1x128xf32>
    %27 = arith.subf %25, %26 : vector<1x128xf32>
    %28 = vector.broadcast %24 : vector<1x128xf32> to vector<128x128xf32>
    %29 = arith.mulf %6, %28 : vector<128x128xf32>
    %30 = vector.broadcast %27 : vector<1x128xf32> to vector<128x128xf32>
    %31 = arith.addf %29, %30 : vector<128x128xf32>
    %cst_11 = arith.constant 0.000000e+00 : f32
    %32 = vector.broadcast %cst_11 : f32 to vector<128x128xf32>
    %33 = arith.maximumf %31, %32 : vector<128x128xf32>
    %c0_12 = arith.constant 0 : index
    %c0_13 = arith.constant 0 : index
    %34 = vector.load %arg3[%c0_12, %c0_13] : memref<128x128xf32, #tpu.memory_space<vmem>>, vector<128x128xf32>
    %cst_14 = arith.constant dense<0.000000e+00> : vector<128x128xf32>
    %35 = tpu.matmul %33, %34, %cst_14 {dimension_numbers = #tpu.dot_dimension_numbers<[1], [0], [0], [1], [0, 0, 1, 1], [], []>} : vector<128x128xf32>, vector<128x128xf32>, vector<128x128xf32> -> vector<128x128xf32>
    %c0_15 = arith.constant 0 : index
    %c0_16 = arith.constant 0 : index
    %36 = vector.load %arg4[%c0_15, %c0_16] : memref<3x128xf32, #tpu.memory_space<vmem>>, vector<3x128xf32>
    %37 = vector.extract_strided_slice %36 {offsets = [0, 0], sizes = [1, 128], strides = [1, 1]} : vector<3x128xf32> to vector<1x128xf32>
    %38 = vector.broadcast %37 : vector<1x128xf32> to vector<128x128xf32>
    %39 = arith.addf %35, %38 : vector<128x128xf32>
    %cst_17 = arith.constant dense<0.000000e+00> : vector<128xf32>
    %40 = vector.multi_reduction <add>, %39, %cst_17 [0] : vector<128x128xf32> to vector<128xf32>
    %41 = vector.shape_cast %40 : vector<128xf32> to vector<1x128xf32>
    %cst_18 = arith.constant 7.812500e-03 : f32
    %42 = vector.broadcast %cst_18 : f32 to vector<1x128xf32>
    %43 = arith.mulf %41, %42 : vector<1x128xf32>
    %44 = arith.mulf %39, %39 : vector<128x128xf32>
    %cst_19 = arith.constant dense<0.000000e+00> : vector<128xf32>
    %45 = vector.multi_reduction <add>, %44, %cst_19 [0] : vector<128x128xf32> to vector<128xf32>
    %46 = vector.shape_cast %45 : vector<128xf32> to vector<1x128xf32>
    %cst_20 = arith.constant 7.812500e-03 : f32
    %47 = vector.broadcast %cst_20 : f32 to vector<1x128xf32>
    %48 = arith.mulf %46, %47 : vector<1x128xf32>
    %49 = arith.mulf %43, %43 : vector<1x128xf32>
    %50 = arith.subf %48, %49 : vector<1x128xf32>
    %cst_21 = arith.constant 0.000000e+00 : f32
    %51 = vector.broadcast %cst_21 : f32 to vector<1x128xf32>
    %52 = arith.maximumf %50, %51 : vector<1x128xf32>
    %53 = vector.extract_strided_slice %36 {offsets = [1, 0], sizes = [1, 128], strides = [1, 1]} : vector<3x128xf32> to vector<1x128xf32>
    %cst_22 = arith.constant 9.99999974E-6 : f32
    %54 = vector.broadcast %cst_22 : f32 to vector<1x128xf32>
    %55 = arith.addf %52, %54 : vector<1x128xf32>
    %56 = math.rsqrt %55 : vector<1x128xf32>
    %57 = arith.mulf %53, %56 : vector<1x128xf32>
    %58 = vector.extract_strided_slice %36 {offsets = [2, 0], sizes = [1, 128], strides = [1, 1]} : vector<3x128xf32> to vector<1x128xf32>
    %59 = arith.mulf %43, %57 : vector<1x128xf32>
    %60 = arith.subf %58, %59 : vector<1x128xf32>
    %61 = vector.broadcast %57 : vector<1x128xf32> to vector<128x128xf32>
    %62 = arith.mulf %39, %61 : vector<128x128xf32>
    %63 = vector.broadcast %60 : vector<1x128xf32> to vector<128x128xf32>
    %64 = arith.addf %62, %63 : vector<128x128xf32>
    %cst_23 = arith.constant 0.000000e+00 : f32
    %65 = vector.broadcast %cst_23 : f32 to vector<128x128xf32>
    %66 = arith.maximumf %64, %65 : vector<128x128xf32>
    %c0_24 = arith.constant 0 : index
    %c0_25 = arith.constant 0 : index
    %67 = vector.load %arg5[%c0_24, %c0_25] : memref<128x128xf32, #tpu.memory_space<vmem>>, vector<128x128xf32>
    %cst_26 = arith.constant dense<0.000000e+00> : vector<128x128xf32>
    %68 = tpu.matmul %66, %67, %cst_26 {dimension_numbers = #tpu.dot_dimension_numbers<[1], [0], [0], [1], [0, 0, 1, 1], [], []>} : vector<128x128xf32>, vector<128x128xf32>, vector<128x128xf32> -> vector<128x128xf32>
    %c0_27 = arith.constant 0 : index
    %c0_28 = arith.constant 0 : index
    %69 = vector.load %arg6[%c0_27, %c0_28] : memref<1x128xf32, #tpu.memory_space<vmem>>, vector<1x128xf32>
    %70 = vector.broadcast %69 : vector<1x128xf32> to vector<128x128xf32>
    %71 = arith.addf %68, %70 : vector<128x128xf32>
    %c0_29 = arith.constant 0 : index
    %c0_30 = arith.constant 0 : index
    %72 = vector.load %arg7[%c0_29, %c0_30] : memref<128x128xf32, #tpu.memory_space<vmem>>, vector<128x128xf32>
    tpu.vector_store %arg7[%c0_29, %c0_30], %71 {strides = array<i32>} : memref<128x128xf32, #tpu.memory_space<vmem>>, vector<128x128xf32>,
    return
  }
}

</mosaic_0001>

<bundles_post_ra>
// kernel: fully_connected_new_forward.1
= control target key start
LH: loop header
LB: loop body
LE: loop exit
PB: predicated region body
PF: predicated region fallthrough
CT: control target
= control target key end

     0   :  { %s1687_s1 = inlined_call_operand.vmem [shape: f32[128,128], index: 1, kind: input, shape index: {}]   ;;  %s1688_s0 = inlined_call_operand.vmem [shape: f32[128,128], index: 0, kind: input, shape index: {}]   ;;  %s1689_s3 = inlined_call_operand.vmem [shape: f32[128,128], index: 3, kind: input, shape index: {}]   ;;  %s1690_s2 = inlined_call_operand.vmem [shape: f32[3,128], index: 2, kind: input, shape index: {}]   ;;  %s1691_s5 = inlined_call_operand.vmem [shape: f32[128,128], index: 5, kind: input, shape index: {}]   ;;  %s1692_s4 = inlined_call_operand.vmem [shape: f32[3,128], index: 4, kind: input, shape index: {}]   ;;  %s1693_s6 = inlined_call_operand.vmem [shape: f32[1,128], index: 6, kind: input, shape index: {}]   ;;  %s1694_s7 = inlined_call_operand.vmem [shape: f32[128,128], index: 7, kind: output, shape index: {}]  }
   0x1   :  { %v42_v0 = vld [vmem:[%s1687_s1] sm:$0xff]  ;;  %v43_v1 = vld [vmem:[%s1687_s1 + $0x8] sm:$0xff]  ;;  %v44_v2 = vld [vmem:[%s1687_s1 + $0x10] sm:$0xff] }
   0x2   :  { %v1081_v3 = vpack.c.bf16 %v43_v1, %v42_v0  ;;  %v45_v4 = vld [vmem:[%s1687_s1 + $0x18] sm:$0xff]  ;;  %v46_v6 = vld [vmem:[%s1687_s1 + $0x20] sm:$0xff]  ;;  %v47_v7 = vld [vmem:[%s1687_s1 + $0x28] sm:$0xff]  ;;  %v59_v0 = vlaneseq }
   0x3   :  { %v1085_v5 = vpack.c.bf16 %v45_v4, %v44_v2  ;;  %v1089_v8 = vpack.c.bf16 %v47_v7, %v46_v6  ;;  %v26_v9 = vld [vmem:[%s1688_s0] sm:$0xff]  ;;  %v48_v10 = vld [vmem:[%s1687_s1 + $0x30] sm:$0xff]  ;;  %v49_v11 = vld [vmem:[%s1687_s1 + $0x38] sm:$0xff] }
   0x4   :  { %1082 = vmatprep.subr.bf16.mxu0 %v1081_v3  ;;  %945 = vmatprep.mubr.f32.mxu0 %v26_v9  ;;  %v1093_v12 = vpack.c.bf16 %v49_v11, %v48_v10  ;;  %v50_v13 = vld [vmem:[%s1687_s1 + $0x40] sm:$0xff]  ;;  %v51_v14 = vld [vmem:[%s1687_s1 + $0x48] sm:$0xff]  ;;  %v52_v16 = vld [vmem:[%s1687_s1 + $0x50] sm:$0xff]  ;;  %v1381_v1 = vshrl.u32 %v59_v0, 7 }
   0x5   :  { %1084 = vmatpush3.bf16.msra.mxu0 %v1081_v3  ;;  %v1097_v15 = vpack.c.bf16 %v51_v14, %v50_v13  ;;  %v53_v17 = vld [vmem:[%s1687_s1 + $0x58] sm:$0xff]  ;;  %v54_v19 = vld [vmem:[%s1687_s1 + $0x60] sm:$0xff]  ;;  %v55_v20 = vld [vmem:[%s1687_s1 + $0x68] sm:$0xff] }
   0x6   :  { %1086 = vmatprep.subr.bf16.mxu0 %v1085_v5  ;;  %v1101_v18 = vpack.c.bf16 %v53_v17, %v52_v16  ;;  %v1105_v21 = vpack.c.bf16 %v55_v20, %v54_v19  ;;  %v56_v22 = vld [vmem:[%s1687_s1 + $0x70] sm:$0xff]  ;;  %v57_v23 = vld [vmem:[%s1687_s1 + $0x78] sm:$0xff]  ;;  %v27_v25 = vld [vmem:[%s1688_s0 + $0x8] sm:$0xff]  ;;  %v61_v2 = vsub.s32 0, %v1381_v1 }
   0x7   :  { %v1109_v24 = vpack.c.bf16 %v57_v23, %v56_v22  ;;  %v28_v26 = vld [vmem:[%s1688_s0 + $0x10] sm:$0xff]  ;;  %v29_v27 = vld [vmem:[%s1688_s0 + $0x18] sm:$0xff]  ;;  %v30_v28 = vld [vmem:[%s1688_s0 + $0x20] sm:$0xff] }
   0x8   :  { %v31_v29 = vld [vmem:[%s1688_s0 + $0x28] sm:$0xff]  ;;  %v32_v30 = vld [vmem:[%s1688_s0 + $0x30] sm:$0xff]  ;;  %v33_v31 = vld [vmem:[%s1688_s0 + $0x38] sm:$0xff] }
   0x9   :  { %1088 = vmatpush3.bf16.msra.mxu0 %v1085_v5  ;;  %v34_v32 = vld [vmem:[%s1688_s0 + $0x40] sm:$0xff]  ;;  %v35_v33 = vld [vmem:[%s1688_s0 + $0x48] sm:$0xff]  ;;  %v36_v34 = vld [vmem:[%s1688_s0 + $0x50] sm:$0xff] }
   0xa   :  { %1090 = vmatprep.subr.bf16.mxu0 %v1089_v8  ;;  %v37_v35 = vld [vmem:[%s1688_s0 + $0x58] sm:$0xff]  ;;  %v38_v36 = vld [vmem:[%s1688_s0 + $0x60] sm:$0xff]  ;;  %v39_v37 = vld [vmem:[%s1688_s0 + $0x68] sm:$0xff] }
   0xb   :  { %v40_v38 = vld [vmem:[%s1688_s0 + $0x70] sm:$0xff]  ;;  %v41_v39 = vld [vmem:[%s1688_s0 + $0x78] sm:$0xff]  ;;  %v335_v40 = vld [vmem:[%s1689_s3] sm:$0xff] }
   0xc   :  { %v336_v41 = vld [vmem:[%s1689_s3 + $0x8] sm:$0xff]  ;;  %v337_v43 = vld [vmem:[%s1689_s3 + $0x10] sm:$0xff]  ;;  %v338_v44 = vld [vmem:[%s1689_s3 + $0x18] sm:$0xff] }
   0xd   :  { %1092 = vmatpush3.bf16.msra.mxu0 %v1089_v8  ;;  %v1113_v42 = vpack.c.bf16 %v336_v41, %v335_v40  ;;  %v1117_v45 = vpack.c.bf16 %v338_v44, %v337_v43  ;;  %v339_v46 = vld [vmem:[%s1689_s3 + $0x20] sm:$0xff]  ;;  %v340_v47 = vld [vmem:[%s1689_s3 + $0x28] sm:$0xff]  ;;  %v341_v49 = vld [vmem:[%s1689_s3 + $0x30] sm:$0xff] }
   0xe   :  { %1094 = vmatprep.subr.bf16.mxu0 %v1093_v12  ;;  %v1121_v48 = vpack.c.bf16 %v340_v47, %v339_v46  ;;  %v342_v50 = vld [vmem:[%s1689_s3 + $0x38] sm:$0xff]  ;;  %v343_v52 = vld [vmem:[%s1689_s3 + $0x40] sm:$0xff]  ;;  %v344_v53 = vld [vmem:[%s1689_s3 + $0x48] sm:$0xff] }
   0xf   :  { %1114 = vmatprep.subr.bf16.mxu1 %v1113_v42  ;;  %v1125_v51 = vpack.c.bf16 %v342_v50, %v341_v49  ;;  %v1129_v54 = vpack.c.bf16 %v344_v53, %v343_v52  ;;  %v345_v55 = vld [vmem:[%s1689_s3 + $0x50] sm:$0xff]  ;;  %v346_v56 = vld [vmem:[%s1689_s3 + $0x58] sm:$0xff]  ;;  %v347_v58 = vld [vmem:[%s1689_s3 + $0x60] sm:$0xff] }
  0x10   :  { %1116 = vmatpush3.bf16.msra.mxu1 %v1113_v42  ;;  %v1133_v57 = vpack.c.bf16 %v346_v56, %v345_v55  ;;  %v348_v59 = vld [vmem:[%s1689_s3 + $0x68] sm:$0xff]  ;;  %v349_v61 = vld [vmem:[%s1689_s3 + $0x70] sm:$0xff]  ;;  %v350_v62 = vld [vmem:[%s1689_s3 + $0x78] sm:$0xff] }
  0x11   :  { %1096 = vmatpush3.bf16.msra.mxu0 %v1093_v12  ;;  %1118 = vmatprep.subr.bf16.mxu1 %v1117_v45  ;;  %v1137_v60 = vpack.c.bf16 %v348_v59, %v347_v58  ;;  %v1141_v63 = vpack.c.bf16 %v350_v62, %v349_v61  ;;  %v1387_v3 = vld [vmem:[%s1690_s2] sm:$0x7] }
  0x12   :  { %1098 = vmatprep.subr.bf16.mxu0 %v1097_v15  ;;  %v1392_v4 = vrot.slane %v1387_v3, %v61_v2 }
  0x14   :  { %1120 = vmatpush3.bf16.msra.mxu1 %v1117_v45 }
  0x15   :  { %1100 = vmatpush3.bf16.msra.mxu0 %v1097_v15  ;;  %1122 = vmatprep.subr.bf16.mxu1 %v1121_v48 }
  0x16   :  { %1102 = vmatprep.subr.bf16.mxu0 %v1101_v18 }
  0x18   :  { %1124 = vmatpush3.bf16.msra.mxu1 %v1121_v48 }
  0x19   :  { %1104 = vmatpush3.bf16.msra.mxu0 %v1101_v18  ;;  %1126 = vmatprep.subr.bf16.mxu1 %v1125_v51 }
  0x1a   :  { %1106 = vmatprep.subr.bf16.mxu0 %v1105_v21 }
  0x1c   :  { %1128 = vmatpush3.bf16.msra.mxu1 %v1125_v51 }
  0x1d   :  { %1108 = vmatpush3.bf16.msra.mxu0 %v1105_v21  ;;  %1130 = vmatprep.subr.bf16.mxu1 %v1129_v54 }
  0x1e   :  { %1110 = vmatprep.subr.bf16.mxu0 %v1109_v24 }
  0x20   :  { %1132 = vmatpush3.bf16.msra.mxu1 %v1129_v54 }
  0x21   :  { %1112 = vmatpush3.bf16.msra.mxu0 %v1109_v24  ;;  %1134 = vmatprep.subr.bf16.mxu1 %v1133_v57 }
  0x24   :  { %946 = vmatmul.mubr.f32.vlgmr.msra.gmra.mrb[0].mxu0 %v27_v25  ;;  %1136 = vmatpush3.bf16.msra.mxu1 %v1133_v57 }
  0x25   :  { %948 = vmatprep.mubr.f32.mxu0 %v28_v26  ;;  %1138 = vmatprep.subr.bf16.mxu1 %v1137_v60 }
  0x28   :  { %949 = vmatmul.mubr.f32.gmra.mrb[2].mxu0 %v29_v27  ;;  %1140 = vmatpush3.bf16.msra.mxu1 %v1137_v60 }
  0x29   :  { %951 = vmatprep.mubr.f32.mxu0 %v30_v28  ;;  %1142 = vmatprep.subr.bf16.mxu1 %v1141_v63 }
  0x2c   :  { %952 = vmatmul.mubr.f32.gmra.mrb[4].mxu0 %v31_v29  ;;  %1144 = vmatpush3.bf16.msra.mxu1 %v1141_v63 }
  0x2d   :  { %954 = vmatprep.mubr.f32.mxu0 %v32_v30 }
  0x30   :  { %955 = vmatmul.mubr.f32.gmra.mrb[6].mxu0 %v33_v31 }
  0x31   :  { %957 = vmatprep.mubr.f32.mxu0 %v34_v32 }
  0x34   :  { %958 = vmatmul.mubr.f32.gmra.mrb[8].mxu0 %v35_v33 }
  0x35   :  { %960 = vmatprep.mubr.f32.mxu0 %v36_v34 }
  0x38   :  { %961 = vmatmul.mubr.f32.gmra.mrb[10].mxu0 %v37_v35 }
  0x39   :  { %963 = vmatprep.mubr.f32.mxu0 %v38_v36 }
  0x3c   :  { %964 = vmatmul.mubr.f32.gmra.mrb[12].mxu0 %v39_v37 }
  0x3d   :  { %966 = vmatprep.mubr.f32.mxu0 %v40_v38 }
  0x40   :  { %967 = vmatmul.mubr.f32.gmra.mrb[14].mxu0 %v41_v39 }
  0xf7   :  { %v947_v5 = vpop.f32.mrb[0].mxu0 }
  0xf8   :  { %v1395_v6 = vadd.f32 %v947_v5, %v1392_v4  ;;  %v129_v7 = vpop.f32.mrb[1].mxu0 }
  0xf9   :  { %v1398_v8 = vadd.f32 %v129_v7, %v1392_v4 }
  0xfa   :  { %v231_v9 = vmul.f32 %v1395_v6, %v1395_v6 }
  0xfb   :  { %v230_v10 = vmul.f32 %v1398_v8, %v1398_v8  ;;  %v950_v11 = vpop.f32.mrb[2].mxu0  ;;  %v208_v13 = vadd.f32 %v1395_v6, %v1398_v8 }
  0xfc   :  { %v139_v12 = vpop.f32.mrb[3].mxu0  ;;  %v1407_v14 = vadd.f32 %v950_v11, %v1392_v4 }
  0xfd   :  { %v1410_v15 = vadd.f32 %v139_v12, %v1392_v4  ;;  %v246_v16 = vadd.f32 %v231_v9, %v230_v10 }
  0xfe   :  { %v233_v22 = vmul.f32 %v1407_v14, %v1407_v14 }
  0xff   :  { %v209_v17 = vadd.f32 %v208_v13, %v1410_v15  ;;  %v232_v18 = vmul.f32 %v1410_v15, %v1410_v15  ;;  %v953_v19 = vpop.f32.mrb[4].mxu0 }
 0x100   :  { %v1416_v20 = vadd.f32 %v953_v19, %v1392_v4  ;;  %v149_v21 = vpop.f32.mrb[5].mxu0 }
 0x101   :  { %v247_v23 = vadd.f32 %v246_v16, %v232_v18  ;;  %v1421_v24 = vadd.f32 %v149_v21, %v1392_v4  ;;  %v210_v25 = vadd.f32 %v209_v17, %v1407_v14 }
 0x102   :  { %v235_v30 = vmul.f32 %v1416_v20, %v1416_v20 }
 0x103   :  { %v211_v26 = vadd.f32 %v210_v25, %v1421_v24  ;;  %v234_v27 = vmul.f32 %v1421_v24, %v1421_v24  ;;  %v248_v28 = vadd.f32 %v247_v23, %v233_v22  ;;  %v956_v29 = vpop.f32.mrb[6].mxu0 }
 0x104   :  { %v159_v31 = vpop.f32.mrb[7].mxu0  ;;  %v1430_v33 = vadd.f32 %v956_v29, %v1392_v4 }
 0x105   :  { %v249_v32 = vadd.f32 %v248_v28, %v234_v27  ;;  %v1433_v34 = vadd.f32 %v159_v31, %v1392_v4  ;;  %v212_v35 = vadd.f32 %v211_v26, %v1416_v20 }
 0x106   :  { %v237_v42 = vmul.f32 %v1430_v33, %v1430_v33 }
 0x107   :  { %v213_v36 = vadd.f32 %v212_v35, %v1433_v34  ;;  %v236_v37 = vmul.f32 %v1433_v34, %v1433_v34  ;;  %v250_v38 = vadd.f32 %v249_v32, %v235_v30  ;;  %v959_v39 = vpop.f32.mrb[8].mxu0 }
 0x108   :  { %v1440_v40 = vadd.f32 %v959_v39, %v1392_v4  ;;  %v169_v41 = vpop.f32.mrb[9].mxu0 }
 0x109   :  { %v251_v43 = vadd.f32 %v250_v38, %v236_v37  ;;  %v1445_v44 = vadd.f32 %v169_v41, %v1392_v4  ;;  %v214_v45 = vadd.f32 %v213_v36, %v1430_v33 }
 0x10a   :  { %v239_v50 = vmul.f32 %v1440_v40, %v1440_v40 }
 0x10b   :  { %v215_v46 = vadd.f32 %v214_v45, %v1445_v44  ;;  %v238_v47 = vmul.f32 %v1445_v44, %v1445_v44  ;;  %v252_v48 = vadd.f32 %v251_v43, %v237_v42  ;;  %v962_v49 = vpop.f32.mrb[10].mxu0 }
 0x10c   :  { %v179_v51 = vpop.f32.mrb[11].mxu0  ;;  %v1454_v53 = vadd.f32 %v962_v49, %v1392_v4 }
 0x10d   :  { %v253_v52 = vadd.f32 %v252_v48, %v238_v47  ;;  %v1457_v54 = vadd.f32 %v179_v51, %v1392_v4  ;;  %v216_v55 = vadd.f32 %v215_v46, %v1440_v40 }
 0x10e   :  { %v241_v62 = vmul.f32 %v1454_v53, %v1454_v53 }
 0x10f   :  { %v217_v56 = vadd.f32 %v216_v55, %v1457_v54  ;;  %v240_v57 = vmul.f32 %v1457_v54, %v1457_v54  ;;  %v254_v58 = vadd.f32 %v253_v52, %v239_v50  ;;  %v965_v59 = vpop.f32.mrb[12].mxu0  ;;  %v281_v50 = vsub.s32 1, %v1381_v1 }
 0x110   :  { %v1464_v60 = vadd.f32 %v965_v59, %v1392_v4  ;;  %v189_v61 = vpop.f32.mrb[13].mxu0  ;;  %v301_v59 = vsub.s32 2, %v1381_v1 }
 0x111   :  { %v255_v63 = vadd.f32 %v254_v58, %v240_v57  ;;  %v190_v0 = vadd.f32 %v189_v61, %v1392_v4  ;;  %v218_v5 = vadd.f32 %v217_v56, %v1454_v53 }
 0x112   :  { %v243_v12 = vmul.f32 %v1464_v60, %v1464_v60 }
 0x113   :  { %v219_v7 = vadd.f32 %v218_v5, %v190_v0  ;;  %v242_v9 = vmul.f32 %v190_v0, %v190_v0  ;;  %v256_v10 = vadd.f32 %v255_v63, %v241_v62  ;;  %v968_v11 = vpop.f32.mrb[14].mxu0 }
 0x114   :  { %v199_v13 = vpop.f32.mrb[15].mxu0  ;;  %v205_v17 = vadd.f32 %v968_v11, %v1392_v4 }
 0x115   :  { %v257_v16 = vadd.f32 %v256_v10, %v242_v9  ;;  %v200_v18 = vadd.f32 %v199_v13, %v1392_v4  ;;  %v220_v19 = vadd.f32 %v219_v7, %v1464_v60 }
 0x116   :  { %v245_v25 = vmul.f32 %v205_v17, %v205_v17 }
 0x117   :  { %v221_v21 = vadd.f32 %v220_v19, %v200_v18  ;;  %v244_v22 = vmul.f32 %v200_v18, %v200_v18  ;;  %v258_v23 = vadd.f32 %v257_v16, %v243_v12 }
 0x119   :  { %v222_v26 = vadd.f32 %v221_v21, %v205_v17  ;;  %v259_v27 = vadd.f32 %v258_v23, %v244_v22 }
 0x11b   :  { %v223_v28 = vrot.slane %v222_v26, 4  ;;  %v260_v29 = vadd.f32 %v259_v27, %v245_v25 }
 0x11d   :  { %v224_v30 = vadd.f32 %v223_v28, %v222_v26  ;;  %v261_v31 = vrot.slane %v260_v29, 4 }
 0x11f   :  { %v225_v32 = vrot.slane %v224_v30, 2  ;;  %v262_v35 = vadd.f32 %v261_v31, %v260_v29 }
 0x121   :  { %v226_v36 = vadd.f32 %v225_v32, %v224_v30  ;;  %v263_v37 = vrot.slane %v262_v35, 2 }
 0x123   :  { %v227_v38 = vrot.slane %v226_v36, 1  ;;  %v264_v39 = vadd.f32 %v263_v37, %v262_v35 }
 0x125   :  { %v228_v41 = vadd.f32 %v227_v38, %v226_v36  ;;  %v265_v4 = vrot.slane %v264_v39, 1 }
 0x127   :  { %v229_v42 = vmul.f32 0.0078125, %v228_v41  ;;  %v266_v43 = vadd.f32 %v265_v4, %v264_v39 }
 0x129   :  { %v267_v45 = vmul.f32 0.0078125, %v266_v43  ;;  %v268_v46 = vmul.f32 %v229_v42, %v229_v42 }
 0x12b   :  { %v269_v47 = vsub.f32 %v267_v45, %v268_v46  ;;  %v628_v45 = vld [vmem:[%s1691_s5] sm:$0xff]  ;;  %v629_v46 = vld [vmem:[%s1691_s5 + $0x8] sm:$0xff] }
 0x12d   :  { %v270_v48 = vmax.f32 %v269_v47, 0.0  ;;  %v1145_v47 = vpack.c.bf16 %v629_v46, %v628_v45 }
 0x12f   :  { %v271_v49 = vadd.f32 1e-05, %v270_v48  ;;  %1146 = vmatprep.subr.bf16.mxu0 %v1145_v47  ;;  %1177 = vmatprep.subr.bf16.mxu1 %v1145_v47  ;;  %v630_v48 = vld [vmem:[%s1691_s5 + $0x10] sm:$0xff] }
 0x130   :  { %1148 = vmatpush3.bf16.msra.mxu0 %v1145_v47 }
 0x131   :  { %1193 = vrsqrt.f32 %v271_v49  ;;  %v631_v49 = vld [vmem:[%s1691_s5 + $0x18] sm:$0xff] }
 0x13b   :  { %v1194_v51 = vpop.eup %1193 }
 0x13c   :  { %v273_v52 = vmul.f32 %v1194_v51, %v1387_v3  ;;  %v1149_v51 = vpack.c.bf16 %v631_v49, %v630_v48 }
 0x13e   :  { %v274_v55 = vmul.f32 %v273_v52, %v229_v42  ;;  %v282_v56 = vrot.slane %v273_v52, %v281_v50  ;;  %1150 = vmatprep.subr.bf16.mxu0 %v1149_v51  ;;  %v632_v52 = vld [vmem:[%s1691_s5 + $0x20] sm:$0xff] }
 0x13f   :  { %1152 = vmatpush3.bf16.msra.mxu0 %v1149_v51 }
 0x140   :  { %v276_v57 = vrot.slane %v274_v55, 7  ;;  %v297_v58 = vmul.f32 %v282_v56, %v200_v18  ;;  %v283_v61 = vmul.f32 %v282_v56, %v1398_v8  ;;  %v284_v62 = vmul.f32 %v282_v56, %v1395_v6  ;;  %v633_v55 = vld [vmem:[%s1691_s5 + $0x28] sm:$0xff] }
 0x141   :  { %v285_v63 = vmul.f32 %v282_v56, %v1410_v15  ;;  %v287_v5 = vmul.f32 %v282_v56, %v1421_v24  ;;  %v288_v7 = vmul.f32 %v282_v56, %v1416_v20  ;;  %v289_v10 = vmul.f32 %v282_v56, %v1433_v34 }
 0x142   :  { %v278_v9 = vsub.f32 %v1387_v3, %v276_v57  ;;  %v290_v11 = vmul.f32 %v282_v56, %v1430_v33  ;;  %v291_v12 = vmul.f32 %v282_v56, %v1445_v44  ;;  %v292_v13 = vmul.f32 %v282_v56, %v1440_v40  ;;  %v634_v57 = vld [vmem:[%s1691_s5 + $0x30] sm:$0xff] }
 0x143   :  { %v293_v8 = vmul.f32 %v282_v56, %v1457_v54  ;;  %v294_v6 = vmul.f32 %v282_v56, %v1454_v53  ;;  %v295_v16 = vmul.f32 %v282_v56, %v190_v0  ;;  %v286_v20 = vmul.f32 %v282_v56, %v1407_v14 }
 0x144   :  { %v302_v15 = vrot.slane %v278_v9, %v301_v59  ;;  %v296_v3 = vmul.f32 %v282_v56, %v1464_v60  ;;  %v298_v24 = vmul.f32 %v282_v56, %v205_v17  ;;  %v1153_v56 = vpack.c.bf16 %v633_v55, %v632_v52  ;;  %v639_v9 = vld [vmem:[%s1691_s5 + $0x58] sm:$0xff] }
 0x146   :  { %v303_v34 = vadd.f32 %v302_v15, %v283_v61  ;;  %v304_v18 = vadd.f32 %v302_v15, %v284_v62  ;;  %v305_v33 = vadd.f32 %v302_v15, %v285_v63  ;;  %v306_v19 = vadd.f32 %v302_v15, %v286_v20  ;;  %1154 = vmatprep.subr.bf16.mxu0 %v1153_v56  ;;  %v636_v62 = vld [vmem:[%s1691_s5 + $0x40] sm:$0xff]  ;;  %v637_v63 = vld [vmem:[%s1691_s5 + $0x48] sm:$0xff] }
 0x147   :  { %v307_v44 = vadd.f32 %v302_v15, %v287_v5  ;;  %v308_v21 = vadd.f32 %v302_v15, %v288_v7  ;;  %v309_v40 = vadd.f32 %v302_v15, %v289_v10  ;;  %v310_v22 = vadd.f32 %v302_v15, %v290_v11  ;;  %1156 = vmatpush3.bf16.msra.mxu0 %v1153_v56  ;;  %v638_v7 = vld [vmem:[%s1691_s5 + $0x50] sm:$0xff]  ;;  %v640_v11 = vld [vmem:[%s1691_s5 + $0x60] sm:$0xff] }
 0x148   :  { %v319_v54 = vmax.f32 %v303_v34, 0.0  ;;  %v320_v23 = vmax.f32 %v304_v18, 0.0  ;;  %v321_v53 = vmax.f32 %v305_v33, 0.0  ;;  %v311_v0 = vadd.f32 %v302_v15, %v291_v12  ;;  %v641_v12 = vld [vmem:[%s1691_s5 + $0x68] sm:$0xff] }
 0x149   :  { %v312_v25 = vadd.f32 %v302_v15, %v292_v13  ;;  %v313_v26 = vadd.f32 %v302_v15, %v293_v8  ;;  %v314_v27 = vadd.f32 %v302_v15, %v294_v6  ;;  %v315_v14 = vadd.f32 %v302_v15, %v295_v16  ;;  %v642_v13 = vld [vmem:[%s1691_s5 + $0x70] sm:$0xff]  ;;  %v643_v6 = vld [vmem:[%s1691_s5 + $0x78] sm:$0xff] }
 0x14a   :  { %1001 = vmatprep.mubr.f32.mxu1 %v319_v54  ;;  %v316_v60 = vadd.f32 %v302_v15, %v296_v3  ;;  %v317_v17 = vadd.f32 %v302_v15, %v297_v58  ;;  %v318_v28 = vadd.f32 %v302_v15, %v298_v24  ;;  %v322_v29 = vmax.f32 %v306_v19, 0.0  ;;  %v635_v58 = vld [vmem:[%s1691_s5 + $0x38] sm:$0xff]  ;;  %v1547_v15 = vld [vmem:[%s1692_s4] sm:$0x7] }
 0x14b   :  { %1002 = vmatmul.mubr.f32.vlgmr.msra.gmra.mrb[0].mxu1 %v320_v23  ;;  %v323_v30 = vmax.f32 %v307_v44, 0.0  ;;  %v324_v31 = vmax.f32 %v308_v21, 0.0  ;;  %v325_v32 = vmax.f32 %v309_v40, 0.0  ;;  %v326_v35 = vmax.f32 %v310_v22, 0.0 }
 0x14c   :  { %1004 = vmatprep.mubr.f32.mxu1 %v321_v53  ;;  %v327_v36 = vmax.f32 %v311_v0, 0.0  ;;  %v328_v37 = vmax.f32 %v312_v25, 0.0  ;;  %v329_v38 = vmax.f32 %v313_v26, 0.0  ;;  %v330_v39 = vmax.f32 %v314_v27, 0.0  ;;  %1185 = vmatpush3.bf16.msra.mxu1 %v1145_v47 }
 0x14d   :  { %v331_v41 = vmax.f32 %v315_v14, 0.0  ;;  %v332_v4 = vmax.f32 %v316_v60, 0.0  ;;  %v333_v42 = vmax.f32 %v317_v17, 0.0  ;;  %v334_v43 = vmax.f32 %v318_v28, 0.0  ;;  %1178 = vmatprep.subr.bf16.mxu1 %v1149_v51 }
 0x14e   :  { %v1157_v61 = vpack.c.bf16 %v635_v58, %v634_v57  ;;  %v1161_v5 = vpack.c.bf16 %v637_v63, %v636_v62  ;;  %v1165_v10 = vpack.c.bf16 %v639_v9, %v638_v7  ;;  %v1169_v8 = vpack.c.bf16 %v641_v12, %v640_v11 }
 0x14f   :  { %1005 = vmatmul.mubr.f32.gmra.mrb[2].mxu1 %v322_v29  ;;  %v1173_v16 = vpack.c.bf16 %v643_v6, %v642_v13  ;;  %v1552_v20 = vrot.slane %v1547_v15, %v61_v2 }
 0x150   :  { %1007 = vmatprep.mubr.f32.mxu1 %v323_v30  ;;  %1186 = vmatpush3.bf16.msra.mxu1 %v1149_v51 }
 0x151   :  { %1179 = vmatprep.subr.bf16.mxu1 %v1153_v56  ;;  %1158 = vmatprep.subr.bf16.mxu0 %v1157_v61 }
 0x152   :  { %1160 = vmatpush3.bf16.msra.mxu0 %v1157_v61 }
 0x153   :  { %1008 = vmatmul.mubr.f32.gmra.mrb[4].mxu1 %v324_v31  ;;  %1162 = vmatprep.subr.bf16.mxu0 %v1161_v5 }
 0x154   :  { %1010 = vmatprep.mubr.f32.mxu1 %v325_v32  ;;  %1187 = vmatpush3.bf16.msra.mxu1 %v1153_v56 }
 0x155   :  { %1180 = vmatprep.subr.bf16.mxu1 %v1157_v61 }
 0x156   :  { %1164 = vmatpush3.bf16.msra.mxu0 %v1161_v5 }
 0x157   :  { %1011 = vmatmul.mubr.f32.gmra.mrb[6].mxu1 %v326_v35  ;;  %1166 = vmatprep.subr.bf16.mxu0 %v1165_v10 }
 0x158   :  { %1013 = vmatprep.mubr.f32.mxu1 %v327_v36  ;;  %1188 = vmatpush3.bf16.msra.mxu1 %v1157_v61 }
 0x159   :  { %1181 = vmatprep.subr.bf16.mxu1 %v1161_v5 }
 0x15a   :  { %1168 = vmatpush3.bf16.msra.mxu0 %v1165_v10 }
 0x15b   :  { %1014 = vmatmul.mubr.f32.gmra.mrb[8].mxu1 %v328_v37  ;;  %1170 = vmatprep.subr.bf16.mxu0 %v1169_v8 }
 0x15c   :  { %1016 = vmatprep.mubr.f32.mxu1 %v329_v38  ;;  %1189 = vmatpush3.bf16.msra.mxu1 %v1161_v5 }
 0x15d   :  { %1182 = vmatprep.subr.bf16.mxu1 %v1165_v10 }
 0x15e   :  { %1172 = vmatpush3.bf16.msra.mxu0 %v1169_v8 }
 0x15f   :  { %1017 = vmatmul.mubr.f32.gmra.mrb[10].mxu1 %v330_v39  ;;  %1174 = vmatprep.subr.bf16.mxu0 %v1173_v16 }
 0x160   :  { %1019 = vmatprep.mubr.f32.mxu1 %v331_v41  ;;  %1190 = vmatpush3.bf16.msra.mxu1 %v1165_v10 }
 0x161   :  { %1183 = vmatprep.subr.bf16.mxu1 %v1169_v8 }
 0x162   :  { %1176 = vmatpush3.bf16.msra.mxu0 %v1173_v16 }
 0x163   :  { %1020 = vmatmul.mubr.f32.gmra.mrb[12].mxu1 %v332_v4 }
 0x164   :  { %1022 = vmatprep.mubr.f32.mxu1 %v333_v42  ;;  %1191 = vmatpush3.bf16.msra.mxu1 %v1169_v8 }
 0x165   :  { %1184 = vmatprep.subr.bf16.mxu1 %v1173_v16 }
 0x167   :  { %1023 = vmatmul.mubr.f32.gmra.mrb[14].mxu1 %v334_v43 }
 0x168   :  { %1192 = vmatpush3.bf16.msra.mxu1 %v1173_v16 }
 0x21e   :  { %v1003_v3 = vpop.f32.mrb[0].mxu1 }
 0x21f   :  { %v1555_v24 = vadd.f32 %v1003_v3, %v1552_v20  ;;  %v422_v34 = vpop.f32.mrb[1].mxu1 }
 0x220   :  { %v1558_v18 = vadd.f32 %v422_v34, %v1552_v20 }
 0x221   :  { %v524_v33 = vmul.f32 %v1555_v24, %v1555_v24 }
 0x222   :  { %v523_v19 = vmul.f32 %v1558_v18, %v1558_v18  ;;  %v1006_v44 = vpop.f32.mrb[2].mxu1  ;;  %v501_v2 = vadd.f32 %v1555_v24, %v1558_v18 }
 0x223   :  { %v432_v21 = vpop.f32.mrb[3].mxu1  ;;  %v1567_v40 = vadd.f32 %v1006_v44, %v1552_v20 }
 0x224   :  { %v1570_v22 = vadd.f32 %v432_v21, %v1552_v20  ;;  %v539_v54 = vadd.f32 %v524_v33, %v523_v19 }
 0x225   :  { %v526_v27 = vmul.f32 %v1567_v40, %v1567_v40 }
 0x226   :  { %v502_v23 = vadd.f32 %v501_v2, %v1570_v22  ;;  %v525_v53 = vmul.f32 %v1570_v22, %v1570_v22  ;;  %v1009_v0 = vpop.f32.mrb[4].mxu1 }
 0x227   :  { %v1576_v25 = vadd.f32 %v1009_v0, %v1552_v20  ;;  %v442_v26 = vpop.f32.mrb[5].mxu1 }
 0x228   :  { %v540_v14 = vadd.f32 %v539_v54, %v525_v53  ;;  %v1581_v60 = vadd.f32 %v442_v26, %v1552_v20  ;;  %v503_v17 = vadd.f32 %v502_v23, %v1567_v40 }
 0x229   :  { %v528_v32 = vmul.f32 %v1576_v25, %v1576_v25 }
 0x22a   :  { %v504_v28 = vadd.f32 %v503_v17, %v1581_v60  ;;  %v527_v29 = vmul.f32 %v1581_v60, %v1581_v60  ;;  %v541_v30 = vadd.f32 %v540_v14, %v526_v27  ;;  %v1012_v31 = vpop.f32.mrb[6].mxu1 }
 0x22b   :  { %v452_v35 = vpop.f32.mrb[7].mxu1  ;;  %v1590_v37 = vadd.f32 %v1012_v31, %v1552_v20 }
 0x22c   :  { %v542_v36 = vadd.f32 %v541_v30, %v527_v29  ;;  %v1593_v38 = vadd.f32 %v452_v35, %v1552_v20  ;;  %v505_v39 = vadd.f32 %v504_v28, %v1576_v25 }
 0x22d   :  { %v530_v47 = vmul.f32 %v1590_v37, %v1590_v37 }
 0x22e   :  { %v506_v41 = vadd.f32 %v505_v39, %v1593_v38  ;;  %v529_v4 = vmul.f32 %v1593_v38, %v1593_v38  ;;  %v543_v42 = vadd.f32 %v542_v36, %v528_v32  ;;  %v1015_v43 = vpop.f32.mrb[8].mxu1 }
 0x22f   :  { %v1600_v45 = vadd.f32 %v1015_v43, %v1552_v20  ;;  %v462_v46 = vpop.f32.mrb[9].mxu1 }
 0x230   :  { %v544_v48 = vadd.f32 %v543_v42, %v529_v4  ;;  %v1605_v49 = vadd.f32 %v462_v46, %v1552_v20  ;;  %v507_v51 = vadd.f32 %v506_v41, %v1590_v37 }
 0x231   :  { %v532_v58 = vmul.f32 %v1600_v45, %v1600_v45 }
 0x232   :  { %v508_v52 = vadd.f32 %v507_v51, %v1605_v49  ;;  %v531_v55 = vmul.f32 %v1605_v49, %v1605_v49  ;;  %v545_v56 = vadd.f32 %v544_v48, %v530_v47  ;;  %v1018_v57 = vpop.f32.mrb[10].mxu1 }
 0x233   :  { %v472_v61 = vpop.f32.mrb[11].mxu1  ;;  %v478_v63 = vadd.f32 %v1018_v57, %v1552_v20 }
 0x234   :  { %v546_v62 = vadd.f32 %v545_v56, %v531_v55  ;;  %v473_v5 = vadd.f32 %v472_v61, %v1552_v20  ;;  %v509_v7 = vadd.f32 %v508_v52, %v1600_v45 }
 0x235   :  { %v534_v6 = vmul.f32 %v478_v63, %v478_v63 }
 0x236   :  { %v510_v9 = vadd.f32 %v509_v7, %v473_v5  ;;  %v533_v10 = vmul.f32 %v473_v5, %v473_v5  ;;  %v547_v11 = vadd.f32 %v546_v62, %v532_v58  ;;  %v1021_v12 = vpop.f32.mrb[12].mxu1 }
 0x237   :  { %v488_v13 = vadd.f32 %v1021_v12, %v1552_v20  ;;  %v482_v8 = vpop.f32.mrb[13].mxu1 }
 0x238   :  { %v548_v16 = vadd.f32 %v547_v11, %v533_v10  ;;  %v483_v3 = vadd.f32 %v482_v8, %v1552_v20  ;;  %v511_v34 = vadd.f32 %v510_v9, %v478_v63 }
 0x239   :  { %v536_v2 = vmul.f32 %v488_v13, %v488_v13 }
 0x23a   :  { %v512_v33 = vadd.f32 %v511_v34, %v483_v3  ;;  %v535_v19 = vmul.f32 %v483_v3, %v483_v3  ;;  %v549_v44 = vadd.f32 %v548_v16, %v534_v6  ;;  %v1024_v21 = vpop.f32.mrb[14].mxu1 }
 0x23b   :  { %v492_v54 = vpop.f32.mrb[15].mxu1  ;;  %v498_v53 = vadd.f32 %v1024_v21, %v1552_v20 }
 0x23c   :  { %v550_v23 = vadd.f32 %v549_v44, %v535_v19  ;;  %v493_v0 = vadd.f32 %v492_v54, %v1552_v20  ;;  %v513_v26 = vadd.f32 %v512_v33, %v488_v13 }
 0x23d   :  { %v538_v28 = vmul.f32 %v498_v53, %v498_v53 }
 0x23e   :  { %v514_v27 = vadd.f32 %v513_v26, %v493_v0  ;;  %v537_v14 = vmul.f32 %v493_v0, %v493_v0  ;;  %v551_v17 = vadd.f32 %v550_v23, %v536_v2 }
 0x240   :  { %v515_v29 = vadd.f32 %v514_v27, %v498_v53  ;;  %v552_v30 = vadd.f32 %v551_v17, %v537_v14 }
 0x242   :  { %v516_v31 = vrot.slane %v515_v29, 4  ;;  %v553_v32 = vadd.f32 %v552_v30, %v538_v28 }
 0x244   :  { %v517_v35 = vadd.f32 %v516_v31, %v515_v29  ;;  %v554_v36 = vrot.slane %v553_v32, 4 }
 0x246   :  { %v518_v39 = vrot.slane %v517_v35, 2  ;;  %v555_v41 = vadd.f32 %v554_v36, %v553_v32 }
 0x248   :  { %v519_v4 = vadd.f32 %v518_v39, %v517_v35  ;;  %v556_v42 = vrot.slane %v555_v41, 2 }
 0x24a   :  { %v520_v43 = vrot.slane %v519_v4, 1  ;;  %v557_v46 = vadd.f32 %v556_v42, %v555_v41 }
 0x24c   :  { %v521_v47 = vadd.f32 %v520_v43, %v519_v4  ;;  %v558_v48 = vrot.slane %v557_v46, 1 }
 0x24e   :  { %v522_v20 = vmul.f32 0.0078125, %v521_v47  ;;  %v559_v51 = vadd.f32 %v558_v48, %v557_v46  ;;  %v816_v47 = vld [vmem:[%s1693_s6] ss:$0 sm:$0xff] }
 0x250   :  { %v560_v52 = vmul.f32 0.0078125, %v559_v51  ;;  %v561_v55 = vmul.f32 %v522_v20, %v522_v20 }
 0x252   :  { %v562_v56 = vsub.f32 %v560_v52, %v561_v55 }
 0x254   :  { %v563_v57 = vmax.f32 %v562_v56, 0.0 }
 0x256   :  { %v564_v58 = vadd.f32 1e-05, %v563_v57 }
 0x258   :  { %1195 = vrsqrt.f32 %v564_v58 }
 0x262   :  { %v1196_v61 = vpop.eup %1195 }
 0x263   :  { %v566_v62 = vmul.f32 %v1196_v61, %v1547_v15 }
 0x265   :  { %v567_v7 = vmul.f32 %v566_v62, %v522_v20  ;;  %v575_v9 = vrot.slane %v566_v62, %v281_v50 }
 0x267   :  { %v569_v10 = vrot.slane %v567_v7, 7  ;;  %v590_v11 = vmul.f32 %v575_v9, %v493_v0  ;;  %v584_v12 = vmul.f32 %v575_v9, %v1605_v49  ;;  %v585_v8 = vmul.f32 %v575_v9, %v1600_v45 }
 0x268   :  { %v586_v6 = vmul.f32 %v575_v9, %v473_v5  ;;  %v587_v34 = vmul.f32 %v575_v9, %v478_v63  ;;  %v580_v33 = vmul.f32 %v575_v9, %v1581_v60  ;;  %v576_v19 = vmul.f32 %v575_v9, %v1558_v18 }
 0x269   :  { %v571_v16 = vsub.f32 %v1547_v15, %v569_v10  ;;  %v588_v44 = vmul.f32 %v575_v9, %v483_v3  ;;  %v589_v21 = vmul.f32 %v575_v9, %v488_v13  ;;  %v582_v2 = vmul.f32 %v575_v9, %v1593_v38 }
 0x26a   :  { %v577_v54 = vmul.f32 %v575_v9, %v1555_v24  ;;  %v583_v49 = vmul.f32 %v575_v9, %v1590_v37  ;;  %v591_v45 = vmul.f32 %v575_v9, %v498_v53  ;;  %v578_v5 = vmul.f32 %v575_v9, %v1570_v22 }
 0x26b   :  { %v595_v50 = vrot.slane %v571_v16, %v301_v59  ;;  %v579_v15 = vmul.f32 %v575_v9, %v1567_v40  ;;  %v581_v60 = vmul.f32 %v575_v9, %v1576_v25 }
 0x26d   :  { %v596_v63 = vadd.f32 %v595_v50, %v576_v19  ;;  %v604_v18 = vadd.f32 %v595_v50, %v584_v12  ;;  %v597_v3 = vadd.f32 %v595_v50, %v577_v54  ;;  %v605_v13 = vadd.f32 %v595_v50, %v585_v8 }
 0x26e   :  { %v598_v23 = vadd.f32 %v595_v50, %v578_v5  ;;  %v606_v38 = vadd.f32 %v595_v50, %v586_v6  ;;  %v599_v0 = vadd.f32 %v595_v50, %v579_v15  ;;  %v607_v1 = vadd.f32 %v595_v50, %v587_v34 }
 0x26f   :  { %v612_v59 = vmax.f32 %v596_v63, 0.0  ;;  %v620_v26 = vmax.f32 %v604_v18, 0.0  ;;  %v613_v24 = vmax.f32 %v597_v3, 0.0  ;;  %v621_v27 = vmax.f32 %v605_v13, 0.0 }
 0x270   :  { %v614_v37 = vmax.f32 %v598_v23, 0.0  ;;  %v622_v22 = vmax.f32 %v606_v38, 0.0  ;;  %v600_v53 = vadd.f32 %v595_v50, %v580_v33  ;;  %v608_v40 = vadd.f32 %v595_v50, %v588_v44 }
 0x271   :  { %1057 = vmatprep.mubr.f32.mxu0 %v612_v59  ;;  %1069 = vmatprep.mubr.f32.mxu1 %v620_v26  ;;  %v601_v14 = vadd.f32 %v595_v50, %v581_v60  ;;  %v609_v25 = vadd.f32 %v595_v50, %v589_v21  ;;  %v602_v17 = vadd.f32 %v595_v50, %v582_v2  ;;  %v615_v30 = vmax.f32 %v599_v0, 0.0 }
 0x272   :  { %1058 = vmatmul.mubr.f32.vlgmr.msra.gmra.mrb[16].mxu0 %v613_v24  ;;  %1070 = vmatmul.mubr.f32.vlgmr.msra.gmra.mrb[16].mxu1 %v621_v27  ;;  %v610_v28 = vadd.f32 %v595_v50, %v590_v11  ;;  %v603_v29 = vadd.f32 %v595_v50, %v583_v49  ;;  %v623_v31 = vmax.f32 %v607_v1, 0.0  ;;  %v611_v32 = vadd.f32 %v595_v50, %v591_v45 }
 0x273   :  { %1060 = vmatprep.mubr.f32.mxu0 %v614_v37  ;;  %1072 = vmatprep.mubr.f32.mxu1 %v622_v22  ;;  %v616_v35 = vmax.f32 %v600_v53, 0.0  ;;  %v624_v36 = vmax.f32 %v608_v40, 0.0  ;;  %v617_v39 = vmax.f32 %v601_v14, 0.0  ;;  %v625_v41 = vmax.f32 %v609_v25, 0.0 }
 0x274   :  { %v618_v4 = vmax.f32 %v602_v17, 0.0  ;;  %v626_v42 = vmax.f32 %v610_v28, 0.0  ;;  %v619_v43 = vmax.f32 %v603_v29, 0.0  ;;  %v627_v46 = vmax.f32 %v611_v32, 0.0 }
 0x276   :  { %1061 = vmatmul.mubr.f32.gmra.mrb[18].mxu0 %v615_v30  ;;  %1073 = vmatmul.mubr.f32.gmra.mrb[18].mxu1 %v623_v31 }
 0x277   :  { %1063 = vmatprep.mubr.f32.mxu0 %v616_v35  ;;  %1075 = vmatprep.mubr.f32.mxu1 %v624_v36 }
 0x27a   :  { %1064 = vmatmul.mubr.f32.gmra.mrb[20].mxu0 %v617_v39  ;;  %1076 = vmatmul.mubr.f32.gmra.mrb[20].mxu1 %v625_v41 }
 0x27b   :  { %1066 = vmatprep.mubr.f32.mxu0 %v618_v4  ;;  %1078 = vmatprep.mubr.f32.mxu1 %v626_v42 }
 0x27e   :  { %1067 = vmatmul.mubr.f32.gmra.mrb[22].mxu0 %v619_v43  ;;  %1079 = vmatmul.mubr.f32.gmra.mrb[22].mxu1 %v627_v46 }
 0x345   :  { %v1059_v48 = vpop.f32.mrb[16].mxu0  ;;  %v1071_v20 = vpop.f32.mrb[16].mxu1 }
 0x346   :  { %v723_v51 = vadd.f32 %v1059_v48, %v816_v47  ;;  %v763_v52 = vadd.f32 %v1071_v20, %v816_v47  ;;  %v717_v55 = vpop.f32.mrb[17].mxu0  ;;  %v757_v56 = vpop.f32.mrb[17].mxu1 }
 0x347   :  { %v718_v57 = vadd.f32 %v816_v47, %v717_v55  ;;  %v758_v58 = vadd.f32 %v816_v47, %v757_v56 }
 0x348   :  { %797 = vst [vmem:[%s1694_s7 + $0x8] sm:$0xff] %v723_v51  ;;  %805 = vst [vmem:[%s1694_s7 + $0x48] sm:$0xff] %v763_v52 }
 0x349   :  { %796 = vst [vmem:[%s1694_s7] sm:$0xff] %v718_v57  ;;  %804 = vst [vmem:[%s1694_s7 + $0x40] sm:$0xff] %v758_v58  ;;  %v1062_v61 = vpop.f32.mrb[18].mxu0  ;;  %v1074_v62 = vpop.f32.mrb[18].mxu1 }
 0x34a   :  { %v733_v7 = vadd.f32 %v1062_v61, %v816_v47  ;;  %v773_v9 = vadd.f32 %v1074_v62, %v816_v47  ;;  %v727_v10 = vpop.f32.mrb[19].mxu0  ;;  %v767_v11 = vpop.f32.mrb[19].mxu1 }
 0x34b   :  { %v728_v12 = vadd.f32 %v816_v47, %v727_v10  ;;  %v768_v8 = vadd.f32 %v816_v47, %v767_v11 }
 0x34c   :  { %799 = vst [vmem:[%s1694_s7 + $0x18] sm:$0xff] %v733_v7  ;;  %807 = vst [vmem:[%s1694_s7 + $0x58] sm:$0xff] %v773_v9 }
 0x34d   :  { %798 = vst [vmem:[%s1694_s7 + $0x10] sm:$0xff] %v728_v12  ;;  %806 = vst [vmem:[%s1694_s7 + $0x50] sm:$0xff] %v768_v8  ;;  %v1065_v6 = vpop.f32.mrb[20].mxu0  ;;  %v1077_v16 = vpop.f32.mrb[20].mxu1 }
 0x34e   :  { %v743_v34 = vadd.f32 %v1065_v6, %v816_v47  ;;  %v783_v33 = vadd.f32 %v1077_v16, %v816_v47  ;;  %v737_v19 = vpop.f32.mrb[21].mxu0  ;;  %v777_v44 = vpop.f32.mrb[21].mxu1 }
 0x34f   :  { %v738_v21 = vadd.f32 %v816_v47, %v737_v19  ;;  %v778_v2 = vadd.f32 %v816_v47, %v777_v44 }
 0x350   :  { %801 = vst [vmem:[%s1694_s7 + $0x28] sm:$0xff] %v743_v34  ;;  %809 = vst [vmem:[%s1694_s7 + $0x68] sm:$0xff] %v783_v33 }
 0x351   :  { %800 = vst [vmem:[%s1694_s7 + $0x20] sm:$0xff] %v738_v21  ;;  %808 = vst [vmem:[%s1694_s7 + $0x60] sm:$0xff] %v778_v2  ;;  %v1068_v50 = vpop.f32.mrb[22].mxu0  ;;  %v1080_v54 = vpop.f32.mrb[22].mxu1 }
 0x352   :  { %v753_v49 = vadd.f32 %v1068_v50, %v816_v47  ;;  %v793_v45 = vadd.f32 %v1080_v54, %v816_v47  ;;  %v747_v5 = vpop.f32.mrb[23].mxu0  ;;  %v787_v15 = vpop.f32.mrb[23].mxu1 }
 0x353   :  { %v748_v60 = vadd.f32 %v816_v47, %v747_v5  ;;  %v788_v63 = vadd.f32 %v816_v47, %v787_v15 }
 0x354   :  { %803 = vst [vmem:[%s1694_s7 + $0x38] sm:$0xff] %v753_v49  ;;  %811 = vst [vmem:[%s1694_s7 + $0x78] sm:$0xff] %v793_v45 }
 0x355   :  { %802 = vst [vmem:[%s1694_s7 + $0x30] sm:$0xff] %v748_v60  ;;  %810 = vst [vmem:[%s1694_s7 + $0x70] sm:$0xff] %v788_v63 }

</bundles_post_ra>
